<compile_context>
chip_gen: v7x
topology: tpu7x:2x2x1
jax: 0.10.0
libtpu: 0.0.40
codegen_flags: <defaults>
</compile_context>

<pallas_src>
import jax
import jax.numpy as jnp
from jax import lax
from jax.experimental import pallas as pl
from jax.experimental.pallas import tpu as pltpu


def _round_up(n, m):
    return ((n + m - 1) // m) * m


def _mlp_kernel(x_ref,
                w1_ref, b1_ref,
                w2_ref, b2_ref,
                w3_ref, b3_ref,
                w4_ref, b4_ref,
                o_ref):
    """Fused 4-layer MLP. Activations kept as (hidden, TILE_B): batch on lanes."""
    x = x_ref[...]                                            # (TILE_B, in) f32

    # Layer 1 (f32; K = in_features is tiny so the extra f32 MXU passes are
    # nearly free): contract the 'in' axis of w1 (64, in) and x (TILE_B, in)
    # -> (64, TILE_B).  This is the native A @ B^T MXU form (no XLU transpose).
    h = lax.dot_general(w1_ref[...], x, (((1,), (1,)), ((), ())),
                        preferred_element_type=jnp.float32)
    h = jnp.maximum(h + b1_ref[...], 0.0)

    # Layers 2-3: bf16 MXU operands, f32 accumulation; activations stay
    # (64, TILE_B) so the MXU stationary tile is the wide lane-dense slab and
    # only 64 rows of weights stream per output chunk.
    h = jnp.dot(w2_ref[...], h.astype(jnp.bfloat16),
                preferred_element_type=jnp.float32)
    h = jnp.maximum(h + b2_ref[...], 0.0)
    h = jnp.dot(w3_ref[...], h.astype(jnp.bfloat16),
                preferred_element_type=jnp.float32)
    h = jnp.maximum(h + b3_ref[...], 0.0)

    # Layer 4: (out, 64) @ (64, TILE_B) -> (out, TILE_B).  Batch on the lane
    # axis -> dense 128-lane stores even for out_features == 1 (no vst.msk).
    y = jnp.dot(w4_ref[...], h.astype(jnp.bfloat16),
                preferred_element_type=jnp.float32)
    o_ref[...] = (y + b4_ref[...]).astype(o_ref.dtype)


def net_forward(x, params, *, tile_b=2048):
    """Pallas forward pass of Net.

    x: (B, in_features) float32.
    params: PyTorch-native layout — weights (out_features, in_features),
    biases (out_features,).
    """
    w1, b1, w2, b2, w3, b3, w4, b4 = params
    B, in_features = x.shape
    hidden = w1.shape[0]
    out_features = w4.shape[0]

    # ---- batch tile selection ------------------------------------------------
    # Big enough to amortize ~0.35 us per grid step, but split mid-size batches
    # into >= 2 tiles so v7x's two TensorCores both get work.
    if B <= 128:
        tile = 128
    else:
        tile = min(tile_b, _round_up(-(-B // 2), 128))
    num_tiles = pl.cdiv(B, tile)     # ragged last tile handled by Pallas (no pad)

    # ---- VMEM-resident weights (constant index_maps -> DMA'd once) -----------
    w1f = w1.astype(jnp.float32)                       # layer 1 stays f32
    w2b, w3b, w4b = (w.astype(jnp.bfloat16) for w in (w2, w3, w4))
    # Biases as (out, 1) so they broadcast over the lane (batch) axis.
    b1c, b2c, b3c, b4c = (b.astype(jnp.float32).reshape(-1, 1)
                          for b in (b1, b2, b3, b4))

    def resident(a):   # same block every grid step -> stays resident in VMEM
        return pl.BlockSpec(a.shape, lambda i: (0, 0))

    flops = 2 * B * (in_features * hidden + 2 * hidden * hidden
                     + hidden * out_features)
    bytes_accessed = (B * in_features * 4 + B * out_features * 4
                      + w1f.size * 4 + (w2b.size + w3b.size + w4b.size) * 2
                      + (b1c.size + b2c.size + b3c.size + b4c.size) * 4)

    y = pl.pallas_call(
        _mlp_kernel,
        out_shape=jax.ShapeDtypeStruct((out_features, B), jnp.float32),
        grid=(num_tiles,),
        in_specs=[pl.BlockSpec((tile, in_features), lambda i: (i, 0)),
                  resident(w1f), resident(b1c),
                  resident(w2b), resident(b2c),
                  resident(w3b), resident(b3c),
                  resident(w4b), resident(b4c)],
        out_specs=pl.BlockSpec((out_features, tile), lambda i: (0, i)),
        compiler_params=pltpu.CompilerParams(
            dimension_semantics=("parallel",)),
        cost_estimate=pl.CostEstimate(flops=flops, transcendentals=0,
                                      bytes_accessed=bytes_accessed),
    )(x, w1f, b1c, w2b, b2c, w3b, b3c, w4b, b4c)

    # (out_features, B) -> (B, out_features), matching the PyTorch forward.
    return y.T


def init_params(key, in_features=13, hidden=64, out_features=1):
    """Deterministic synthetic init, PyTorch-native (out, in) weight layout."""
    def linear(k, fan_in, fan_out):
        kw, kb = jax.random.split(k)
        bound = 1.0 / jnp.sqrt(jnp.float32(fan_in))
        w = jax.random.uniform(kw, (fan_out, fan_in), jnp.float32, -bound, bound)
        b = jax.random.uniform(kb, (fan_out,), jnp.float32, -bound, bound)
        return w, b

    k1, k2, k3, k4 = jax.random.split(key, 4)
    w1, b1 = linear(k1, in_features, hidden)
    w2, b2 = linear(k2, hidden, hidden)
    w3, b3 = linear(k3, hidden, hidden)
    w4, b4 = linear(k4, hidden, out_features)
    return (w1, b1, w2, b2, w3, b3, w4, b4)


def net_forward_ref(x, params):
    """Plain-JAX f32 reference (matches the PyTorch forward semantics)."""
    w1, b1, w2, b2, w3, b3, w4, b4 = params
    h = jnp.maximum(x @ w1.T + b1, 0.0)
    h = jnp.maximum(h @ w2.T + b2, 0.0)
    h = jnp.maximum(h @ w3.T + b3, 0.0)
    return h @ w4.T + b4
    # TODO(synk): explainer_mode (.numpy()) and the out_features>1
    # (x[:,0], x[:,1:]) return split are host-side conveniences handled
    # outside the kernel; freeze_batchnorm is a no-op (no BatchNorm layers).


if __name__ == "__main__":
    key = jax.random.PRNGKey(0)
    k_params, k_x, k_x2 = jax.random.split(key, 3)

    in_features = 13
    out_features = 1
    batch = 8

    params = init_params(k_params, in_features=in_features,
                         hidden=64, out_features=out_features)

    # Small-batch demo (single ragged 128-row tile).
    x = jax.random.normal(k_x, (batch, in_features), dtype=jnp.float32)
    y = jax.block_until_ready(net_forward(x, params))
    y_ref = net_forward_ref(x, params)
    assert y.shape == (batch, out_features)
    # bf16 hidden-layer MXU operands -> loosened tolerance vs f32 reference.
    assert jnp.allclose(y, y_ref, atol=5e-2, rtol=5e-2), "mismatch vs reference (B=8)"

    # Multi-tile path: 2 tiles of 1280 rows (megacore split), ragged last block,
    # VMEM-resident weights.
    x2 = jax.random.normal(k_x2, (2500, in_features), dtype=jnp.float32)
    y2 = jax.block_until_ready(net_forward(x2, params))
    y2_ref = net_forward_ref(x2, params)
    assert y2.shape == (2500, out_features)
    assert jnp.allclose(y2, y2_ref, atol=5e-2, rtol=5e-2), "mismatch vs reference (B=2500)"

    print("KERNEL_OK")
</pallas_src>

<mosaic_0001>
module attributes {stable_mosaic.version = 11 : i64} {
  func.func @_mlp_kernel(%arg0: i32, %arg1: memref<128x13xf32, #tpu.memory_space<vmem>>, %arg2: memref<64x13xf32, #tpu.memory_space<vmem>>, %arg3: memref<64x1xf32, #tpu.memory_space<vmem>>, %arg4: memref<64x64xbf16, #tpu.memory_space<vmem>>, %arg5: memref<64x1xf32, #tpu.memory_space<vmem>>, %arg6: memref<64x64xbf16, #tpu.memory_space<vmem>>, %arg7: memref<64x1xf32, #tpu.memory_space<vmem>>, %arg8: memref<1x64xbf16, #tpu.memory_space<vmem>>, %arg9: memref<1x1xf32, #tpu.memory_space<vmem>>, %arg10: memref<1x128xf32, #tpu.memory_space<vmem>>) attributes {dimension_semantics = [#tpu.dimension_semantics<parallel>], iteration_bounds = array<i64: 1>, scalar_prefetch = 0 : i64, scratch_operands = 0 : i64, tpu.core_type = #tpu.core_type<tc>, window_params = [{transform_indices = @transform_0, window_bounds = array<i64: 128, 13>}, {pipeline_mode = #tpu.pipeline_mode<synchronous>, transform_indices = @transform_1, window_bounds = array<i64: 64, 13>}, {pipeline_mode = #tpu.pipeline_mode<synchronous>, transform_indices = @transform_2, window_bounds = array<i64: 64, 1>}, {pipeline_mode = #tpu.pipeline_mode<synchronous>, transform_indices = @transform_3, window_bounds = array<i64: 64, 64>}, {pipeline_mode = #tpu.pipeline_mode<synchronous>, transform_indices = @transform_4, window_bounds = array<i64: 64, 1>}, {pipeline_mode = #tpu.pipeline_mode<synchronous>, transform_indices = @transform_5, window_bounds = array<i64: 64, 64>}, {pipeline_mode = #tpu.pipeline_mode<synchronous>, transform_indices = @transform_6, window_bounds = array<i64: 64, 1>}, {pipeline_mode = #tpu.pipeline_mode<synchronous>, transform_indices = @transform_7, window_bounds = array<i64: 1, 64>}, {pipeline_mode = #tpu.pipeline_mode<synchronous>, transform_indices = @transform_8, window_bounds = array<i64: 1, 1>}, {transform_indices = @transform_9, window_bounds = array<i64: 1, 128>}]} {
    %c0 = arith.constant 0 : index
    %c0_0 = arith.constant 0 : index
    %0 = vector.load %arg1[%c0, %c0_0] : memref<128x13xf32, #tpu.memory_space<vmem>>, vector<128x13xf32>
    %c0_1 = arith.constant 0 : index
    %c0_2 = arith.constant 0 : index
    %1 = vector.load %arg2[%c0_1, %c0_2] : memref<64x13xf32, #tpu.memory_space<vmem>>, vector<64x13xf32>
    %cst = arith.constant dense<0.000000e+00> : vector<64x128xf32>
    %2 = tpu.matmul %1, %0, %cst {dimension_numbers = #tpu.dot_dimension_numbers<[1], [1], [0], [0], [0, 0, 1, 0], [], []>} : vector<64x13xf32>, vector<128x13xf32>, vector<64x128xf32> -> vector<64x128xf32>
    %c0_3 = arith.constant 0 : index
    %c0_4 = arith.constant 0 : index
    %3 = vector.load %arg3[%c0_3, %c0_4] : memref<64x1xf32, #tpu.memory_space<vmem>>, vector<64x1xf32>
    %4 = vector.broadcast %3 : vector<64x1xf32> to vector<64x128xf32>
    %5 = arith.addf %2, %4 : vector<64x128xf32>
    %cst_5 = arith.constant 0.000000e+00 : f32
    %6 = vector.broadcast %cst_5 : f32 to vector<64x128xf32>
    %7 = arith.maximumf %5, %6 : vector<64x128xf32>
    %c0_6 = arith.constant 0 : index
    %c0_7 = arith.constant 0 : index
    %8 = vector.load %arg4[%c0_6, %c0_7] : memref<64x64xbf16, #tpu.memory_space<vmem>>, vector<64x64xbf16>
    %9 = arith.truncf %7 : vector<64x128xf32> to vector<64x128xbf16>
    %cst_8 = arith.constant dense<0.000000e+00> : vector<64x128xf32>
    %10 = tpu.matmul %8, %9, %cst_8 {dimension_numbers = #tpu.dot_dimension_numbers<[1], [0], [0], [1], [0, 0, 1, 1], [], []>} : vector<64x64xbf16>, vector<64x128xbf16>, vector<64x128xf32> -> vector<64x128xf32>
    %c0_9 = arith.constant 0 : index
    %c0_10 = arith.constant 0 : index
    %11 = vector.load %arg5[%c0_9, %c0_10] : memref<64x1xf32, #tpu.memory_space<vmem>>, vector<64x1xf32>
    %12 = vector.broadcast %11 : vector<64x1xf32> to vector<64x128xf32>
    %13 = arith.addf %10, %12 : vector<64x128xf32>
    %cst_11 = arith.constant 0.000000e+00 : f32
    %14 = vector.broadcast %cst_11 : f32 to vector<64x128xf32>
    %15 = arith.maximumf %13, %14 : vector<64x128xf32>
    %c0_12 = arith.constant 0 : index
    %c0_13 = arith.constant 0 : index
    %16 = vector.load %arg6[%c0_12, %c0_13] : memref<64x64xbf16, #tpu.memory_space<vmem>>, vector<64x64xbf16>
    %17 = arith.truncf %15 : vector<64x128xf32> to vector<64x128xbf16>
    %cst_14 = arith.constant dense<0.000000e+00> : vector<64x128xf32>
    %18 = tpu.matmul %16, %17, %cst_14 {dimension_numbers = #tpu.dot_dimension_numbers<[1], [0], [0], [1], [0, 0, 1, 1], [], []>} : vector<64x64xbf16>, vector<64x128xbf16>, vector<64x128xf32> -> vector<64x128xf32>
    %c0_15 = arith.constant 0 : index
    %c0_16 = arith.constant 0 : index
    %19 = vector.load %arg7[%c0_15, %c0_16] : memref<64x1xf32, #tpu.memory_space<vmem>>, vector<64x1xf32>
    %20 = vector.broadcast %19 : vector<64x1xf32> to vector<64x128xf32>
    %21 = arith.addf %18, %20 : vector<64x128xf32>
    %cst_17 = arith.constant 0.000000e+00 : f32
    %22 = vector.broadcast %cst_17 : f32 to vector<64x128xf32>
    %23 = arith.maximumf %21, %22 : vector<64x128xf32>
    %c0_18 = arith.constant 0 : index
    %c0_19 = arith.constant 0 : index
    %24 = vector.load %arg8[%c0_18, %c0_19] : memref<1x64xbf16, #tpu.memory_space<vmem>>, vector<1x64xbf16>
    %25 = arith.truncf %23 : vector<64x128xf32> to vector<64x128xbf16>
    %cst_20 = arith.constant dense<0.000000e+00> : vector<1x128xf32>
    %26 = tpu.matmul %24, %25, %cst_20 {dimension_numbers = #tpu.dot_dimension_numbers<[1], [0], [0], [1], [0, 0, 1, 1], [], []>} : vector<1x64xbf16>, vector<64x128xbf16>, vector<1x128xf32> -> vector<1x128xf32>
    %c0_21 = arith.constant 0 : index
    %c0_22 = arith.constant 0 : index
    %27 = vector.load %arg9[%c0_21, %c0_22] : memref<1x1xf32, #tpu.memory_space<vmem>>, vector<1x1xf32>
    %28 = vector.broadcast %27 : vector<1x1xf32> to vector<1x128xf32>
    %29 = arith.addf %26, %28 : vector<1x128xf32>
    %c0_23 = arith.constant 0 : index
    %c0_24 = arith.constant 0 : index
    %30 = vector.load %arg10[%c0_23, %c0_24] : memref<1x128xf32, #tpu.memory_space<vmem>>, vector<1x128xf32>
    tpu.vector_store %arg10[%c0_23, %c0_24], %29 {strides = array<i32>} : memref<1x128xf32, #tpu.memory_space<vmem>>, vector<1x128xf32>,
    return
  }
  func.func @transform_0(%arg0: i32) -> (i32, i32) {
    %c0_i32 = arith.constant 0 : i32
    %c0_i32_0 = arith.constant 0 : i32
    return %arg0, %c0_i32 : i32, i32
  }
  func.func @transform_1(%arg0: i32) -> (i32, i32) {
    %c0_i32 = arith.constant 0 : i32
    %c0_i32_0 = arith.constant 0 : i32
    %c0_i32_1 = arith.constant 0 : i32
    return %c0_i32, %c0_i32_0 : i32, i32
  }
  func.func @transform_2(%arg0: i32) -> (i32, i32) {
    %c0_i32 = arith.constant 0 : i32
    %c0_i32_0 = arith.constant 0 : i32
    %c0_i32_1 = arith.constant 0 : i32
    return %c0_i32, %c0_i32_0 : i32, i32
  }
  func.func @transform_3(%arg0: i32) -> (i32, i32) {
    %c0_i32 = arith.constant 0 : i32
    %c0_i32_0 = arith.constant 0 : i32
    %c0_i32_1 = arith.constant 0 : i32
    return %c0_i32, %c0_i32_0 : i32, i32
  }
  func.func @transform_4(%arg0: i32) -> (i32, i32) {
    %c0_i32 = arith.constant 0 : i32
    %c0_i32_0 = arith.constant 0 : i32
    %c0_i32_1 = arith.constant 0 : i32
    return %c0_i32, %c0_i32_0 : i32, i32
  }
  func.func @transform_5(%arg0: i32) -> (i32, i32) {
    %c0_i32 = arith.constant 0 : i32
    %c0_i32_0 = arith.constant 0 : i32
    %c0_i32_1 = arith.constant 0 : i32
    return %c0_i32, %c0_i32_0 : i32, i32
  }
  func.func @transform_6(%arg0: i32) -> (i32, i32) {
    %c0_i32 = arith.constant 0 : i32
    %c0_i32_0 = arith.constant 0 : i32
    %c0_i32_1 = arith.constant 0 : i32
    return %c0_i32, %c0_i32_0 : i32, i32
  }
  func.func @transform_7(%arg0: i32) -> (i32, i32) {
    %c0_i32 = arith.constant 0 : i32
    %c0_i32_0 = arith.constant 0 : i32
    %c0_i32_1 = arith.constant 0 : i32
    return %c0_i32, %c0_i32_0 : i32, i32
  }
  func.func @transform_8(%arg0: i32) -> (i32, i32) {
    %c0_i32 = arith.constant 0 : i32
    %c0_i32_0 = arith.constant 0 : i32
    %c0_i32_1 = arith.constant 0 : i32
    return %c0_i32, %c0_i32_0 : i32, i32
  }
  func.func @transform_9(%arg0: i32) -> (i32, i32) {
    %c0_i32 = arith.constant 0 : i32
    %c0_i32_0 = arith.constant 0 : i32
    return %c0_i32, %arg0 : i32, i32
  }
}

</mosaic_0001>

<bundles_post_ra>
// kernel: tpu_custom_call.1
= control target key start
LH: loop header
LB: loop body
LE: loop exit
PB: predicated region body
PF: predicated region fallthrough
CT: control target
= control target key end

     0   :  { %s1253_s0 = inlined_call_operand.vmem [shape: f32[8,13], index: 0, kind: input, shape index: {}]   ;;  %s1254_s1 = inlined_call_operand.vmem [shape: f32[64,13], index: 1, kind: input, shape index: {}]   ;;  %s1255_s2 = inlined_call_operand.vmem [shape: f32[64,1], index: 2, kind: input, shape index: {}]   ;;  %s1256_s3 = inlined_call_operand.vmem [shape: bf16[64,64], index: 3, kind: input, shape index: {}]   ;;  %s1257_s4 = inlined_call_operand.vmem [shape: f32[64,1], index: 4, kind: input, shape index: {}]   ;;  %s1258_s5 = inlined_call_operand.vmem [shape: bf16[64,64], index: 5, kind: input, shape index: {}]   ;;  %s1259_s6 = inlined_call_operand.vmem [shape: f32[64,1], index: 6, kind: input, shape index: {}]   ;;  %s1260_s7 = inlined_call_operand.vmem [shape: bf16[1,64], index: 7, kind: input, shape index: {}]   ;;  %s1261_s8 = inlined_call_operand.<no memory space> [shape: f32[1,1], index: 8, kind: input, shape index: {}]   ;;  %s1262_s9 = inlined_call_operand.hbm [shape: f32[1,8], index: 9, kind: output, shape index: {}]  }
   0x1   :  { %v14_v0 = vstv %s1261_s8 }
   0x2   :  { %15 = vst [vmem:[#allocation2] sm:$0x1] %v14_v0 }
   0x3   :  { %v36_v1 = vld [vmem:[%s1253_s0] sm:$0xff]  ;;  %v37_v2 = vld [vmem:[%s1253_s0 + $0x8] sm:$0xff]  ;;  %vm108_vm0 = vcmask 105472   ;;  %v38_v3 = vld [vmem:[%s1253_s0 + $0x10] sm:$0xff]  ;;  %v958_v7 = vmov 0  }
   0x4   :  { %v872_v4 = vpack.c.bf16 %v37_v2, %v36_v1  ;;  %vm1026_vm1 = vmpackc.low %vm108_vm0, %vm108_vm0  ;;  %v39_v6 = vld [vmem:[%s1253_s0 + $0x18] sm:$0xff]  ;;  %924 = vset.pattern.permute.xlu0 %v958_v7  ;;  %925 = vset.pattern.permute.xlu1 %v958_v7  ;;  %v52_v9 = vld [vmem:[%s1254_s1] sm:$0xff] }
   0x5   :  { %v878_v8 = vpack.c.bf16 %v39_v6, %v38_v3  ;;  %v40_v10 = vld [vmem:[%s1253_s0 + $0x20] sm:$0xff]  ;;  %v41_v11 = vld [vmem:[%s1253_s0 + $0x28] sm:$0xff]  ;;  %816 = vmatprep.mubr.msk.f32.mxu0 %vm108_vm0, %v52_v9  ;;  %v62_v14 = vld [vmem:[%s1255_s2 + $0x10] sm:$0xff] }
   0x6   :  { %874 = vmatprep.subr.msk.bf16.mxu0 %vm1026_vm1, %v872_v4  ;;  %v60_v12 = vld [vmem:[%s1255_s2] sm:$0xff]  ;;  %v884_v13 = vpack.c.bf16 %v41_v11, %v40_v10  ;;  %v61_v15 = vld [vmem:[%s1255_s2 + $0x8] sm:$0xff]  ;;  %80 = vperm.xlu1 %925, %v62_v14   ;;  %v63_v16 = vld [vmem:[%s1255_s2 + $0x18] sm:$0xff] }
   0x7   :  { %877 = vmatpush3.bf16.xpose.msk.msra.mxu0 %vm1026_vm1, %v872_v4  ;;  %70 = vperm.xlu0 %924, %v60_v12   ;;  %v42_v17 = vld [vmem:[%s1253_s0 + $0x30] sm:$0xff]  ;;  %v43_v18 = vld [vmem:[%s1253_s0 + $0x38] sm:$0xff]  ;;  %v64_v19 = vld [vmem:[%s1255_s2 + $0x20] sm:$0xff] }
   0x8   :  { %880 = vmatprep.subr.msk.bf16.mxu0 %vm1026_vm1, %v878_v8  ;;  %v65_v20 = vld [vmem:[%s1255_s2 + $0x28] sm:$0xff]  ;;  %v66_v21 = vld [vmem:[%s1255_s2 + $0x30] sm:$0xff]  ;;  %v890_v22 = vpack.c.bf16 %v43_v18, %v42_v17  ;;  %v67_v23 = vld [vmem:[%s1255_s2 + $0x38] sm:$0xff] }
   0x9   :  { %v44_v24 = vld [vmem:[%s1253_s0 + $0x40] sm:$0xff]  ;;  %v45_v25 = vld [vmem:[%s1253_s0 + $0x48] sm:$0xff] }
   0xa   :  { %85 = vperm.xlu1 %925, %v63_v16   ;;  %v306_v26 = vld [vmem:[%s1257_s4] sm:$0xff] }
   0xb   :  { %75 = vperm.xlu0 %924, %v61_v15  }
   0xe   :  { %95 = vperm.xlu1 %925, %v65_v20  }
   0xf   :  { %883 = vmatpush3.bf16.xpose.msk.msra.mxu0 %vm1026_vm1, %v878_v8  ;;  %90 = vperm.xlu0 %924, %v64_v19  }
  0x10   :  { %886 = vmatprep.subr.msk.bf16.mxu0 %vm1026_vm1, %v884_v13 }
  0x12   :  { %105 = vperm.xlu1 %925, %v67_v23  }
  0x13   :  { %100 = vperm.xlu0 %924, %v66_v21  }
  0x17   :  { %889 = vmatpush3.bf16.xpose.msk.msra.mxu0 %vm1026_vm1, %v884_v13 }
  0x18   :  { %892 = vmatprep.subr.msk.bf16.mxu0 %vm1026_vm1, %v890_v22 }
  0x19   :  { %16 = vsyncpa [#allocation4], 0  ;;  %v307_v27 = vld [vmem:[%s1257_s4 + $0x8] sm:$0xff]  ;;  %v896_v28 = vpack.c.bf16 %v45_v25, %v44_v24  ;;  %316 = vperm.xlu0 %924, %v306_v26   ;;  %v308_v29 = vld [vmem:[%s1257_s4 + $0x10] sm:$0xff]  ;;  %vm374_vm2 = vcmask 523264   ;;  %vm960_vm3 = vmmov 0  }
  0x1a   :  { %321 = vperm.xlu1 %925, %v307_v27   ;;  %v309_v30 = vld [vmem:[%s1257_s4 + $0x18] sm:$0xff]  ;;  %v46_v31 = vld [vmem:[%s1253_s0 + $0x50] sm:$0xff]  ;;  %v310_v33 = vld [vmem:[%s1257_s4 + $0x20] sm:$0xff]  ;;  %s961_s25 = smov [#allocation3]  }
  0x1b   :  { %v47_v32 = vld [vmem:[%s1253_s0 + $0x58] sm:$0xff]  ;;  %v311_v34 = vld [vmem:[%s1257_s4 + $0x28] sm:$0xff]  ;;  %v312_v36 = vld [vmem:[%s1257_s4 + $0x30] sm:$0xff] }
  0x1c   :  { %v902_v35 = vpack.c.bf16 %v47_v32, %v46_v31  ;;  %v313_v37 = vld [vmem:[%s1257_s4 + $0x38] sm:$0xff]  ;;  %v48_v38 = vld [vmem:[%s1253_s0 + $0x60] sm:$0xff]  ;;  %v49_v39 = vld [vmem:[%s1253_s0 + $0x68] sm:$0xff] }
  0x1d   :  { %326 = vperm.xlu0 %924, %v308_v29   ;;  %v472_v40 = vld [vmem:[%s1259_s6] sm:$0xff]  ;;  %v473_v41 = vld [vmem:[%s1259_s6 + $0x8] sm:$0xff]  ;;  %v908_v42 = vpack.c.bf16 %v49_v39, %v48_v38  ;;  %v474_v43 = vld [vmem:[%s1259_s6 + $0x10] sm:$0xff] }
  0x1e   :  { %331 = vperm.xlu1 %925, %v309_v30   ;;  %v475_v44 = vld [vmem:[%s1259_s6 + $0x18] sm:$0xff]  ;;  %v50_v45 = vld [vmem:[%s1253_s0 + $0x70] sm:$0xff]  ;;  %v476_v47 = vld [vmem:[%s1259_s6 + $0x20] sm:$0xff] }
  0x1f   :  { %895 = vmatpush3.bf16.xpose.msk.msra.mxu0 %vm1026_vm1, %v890_v22  ;;  %v51_v46 = vld [vmem:[%s1253_s0 + $0x78] sm:$0xff]  ;;  %v477_v48 = vld [vmem:[%s1259_s6 + $0x28] sm:$0xff]  ;;  %v478_v50 = vld [vmem:[%s1259_s6 + $0x30] sm:$0xff] }
  0x20   :  { %898 = vmatprep.subr.msk.bf16.mxu0 %vm1026_vm1, %v896_v28  ;;  %v914_v49 = vpack.c.bf16 %v51_v46, %v50_v45  ;;  %v479_v51 = vld [vmem:[%s1259_s6 + $0x38] sm:$0xff]  ;;  %v630_v52 = vld [vmem:[#allocation2] sm:$0x1]  ;;  %v53_v53 = vld [vmem:[%s1254_s1 + $0x8] sm:$0xff]  ;;  %s690_s6 = sshll.u32 %s961_s25, 4  ;;  %s691_s6 = int_to_ptr.vmem [resolvable:$true] %s690_s6 }
  0x21   :  { %336 = vperm.xlu0 %924, %v310_v33   ;;  %v54_v54 = vld [vmem:[%s1254_s1 + $0x10] sm:$0xff]  ;;  %v55_v55 = vld [vmem:[%s1254_s1 + $0x18] sm:$0xff]  ;;  %v56_v56 = vld [vmem:[%s1254_s1 + $0x20] sm:$0xff]  ;;  %s934_s26 = scalar_lea.vmem %s691_s6, 16  ;;  %s938_s27 = scalar_lea.vmem %s691_s6, 32 }
  0x22   :  { %341 = vperm.xlu1 %925, %v311_v34   ;;  %v57_v57 = vld [vmem:[%s1254_s1 + $0x28] sm:$0xff]  ;;  %v58_v58 = vld [vmem:[%s1254_s1 + $0x30] sm:$0xff]  ;;  %v59_v59 = vld [vmem:[%s1254_s1 + $0x38] sm:$0xff]  ;;  %p935_p0 = scmp.ne.s32.totalorder %s691_s6, %s934_s26  ;;  %p939_p1 = scmp.lt.s32.totalorder %s691_s6, %s691_s6 }
  0x23   :  { %v926_v60 = vld [vmem:[%s1256_s3] sm:$0xff]   ;;  %v927_v33 = vld [vmem:[%s1256_s3 + $0x8] sm:$0xff]   ;;  %v928_v34 = vld [vmem:[%s1256_s3 + $0x10] sm:$0xff]   ;;  %p940_p2 = scmp.lt.s32.totalorder %s938_s27, %s934_s26 }
  0x24   :  { %836 = vmatprep.mubr.msk.bf16.mxu1 %vm374_vm2, %v926_v60 }
  0x25   :  { %346 = vperm.xlu0 %924, %v312_v36   ;;  %v930_v36 = vld [vmem:[%s1258_s5] sm:$0xff]   ;;  %p941_p3 = por %p940_p2, %p939_p1 }
  0x26   :  { %351 = vperm.xlu1 %925, %v313_v37  }
  0x27   :  { %901 = vmatpush3.bf16.xpose.msk.msra.mxu0 %vm1026_vm1, %v896_v28  ;;  %p942_p4 = pnand %p941_p3, %p935_p0 }
  0x28   :  { %904 = vmatprep.subr.msk.bf16.mxu0 %vm1026_vm1, %v902_v35 }
  0x29   :  { %482 = vperm.xlu0 %924, %v472_v40  }
  0x2a   :  { %487 = vperm.xlu1 %925, %v473_v41  }
  0x2d   :  { %492 = vperm.xlu0 %924, %v474_v43  }
  0x2e   :  { %497 = vperm.xlu1 %925, %v475_v44  }
  0x2f   :  { %907 = vmatpush3.bf16.xpose.msk.msra.mxu0 %vm1026_vm1, %v902_v35  ;;  %v929_v35 = vld [vmem:[%s1256_s3 + $0x18] sm:$0xff]  }
  0x30   :  { %910 = vmatprep.subr.msk.bf16.mxu0 %vm1026_vm1, %v908_v42 }
  0x31   :  { %502 = vperm.xlu0 %924, %v476_v47  }
  0x32   :  { %507 = vperm.xlu1 %925, %v477_v48  }
  0x35   :  { %512 = vperm.xlu0 %924, %v478_v50  }
  0x36   :  { %517 = vperm.xlu1 %925, %v479_v51  }
  0x37   :  { %913 = vmatpush3.bf16.xpose.msk.msra.mxu0 %vm1026_vm1, %v908_v42 }
  0x38   :  { %916 = vmatprep.subr.msk.bf16.mxu0 %vm1026_vm1, %v914_v49 }
  0x39   :  { %633 = vperm.xlu0 %924, %v630_v52  }
  0x3f   :  { %919 = vmatpush3.bf16.xpose.msk.msra.mxu0 %vm1026_vm1, %v914_v49 }
  0x46   :  { %817 = vmatmul.mubr.msk.f32.vlgmr.msra.gmra.mrb[0].mxu0 %vm108_vm0, %v53_v53 }
  0x47   :  { %819 = vmatprep.mubr.msk.f32.mxu0 %vm108_vm0, %v54_v54 }
  0x4a   :  { %820 = vmatmul.mubr.msk.f32.gmra.mrb[2].mxu0 %vm108_vm0, %v55_v55 }
  0x4b   :  { %822 = vmatprep.mubr.msk.f32.mxu0 %vm108_vm0, %v56_v56 }
  0x4e   :  { %823 = vmatmul.mubr.msk.f32.gmra.mrb[4].mxu0 %vm108_vm0, %v57_v57 }
  0x4f   :  { %825 = vmatprep.mubr.msk.f32.mxu0 %vm108_vm0, %v58_v58 }
  0x52   :  { %826 = vmatmul.mubr.msk.f32.gmra.mrb[6].mxu0 %vm108_vm0, %v59_v59 }
  0x85   :  { %v81_v62 = vpop.permute.xlu1 %80 }
  0x86   :  { %v71_v61 = vpop.permute.xlu0 %70 }
  0x89   :  { %v86_v0 = vpop.permute.xlu1 %85 }
  0x8a   :  { %v76_v63 = vpop.permute.xlu0 %75 }
  0x8d   :  { %v96_v10 = vpop.permute.xlu1 %95 }
  0x8e   :  { %v91_v13 = vpop.permute.xlu0 %90 }
  0x91   :  { %v106_v22 = vpop.permute.xlu1 %105 }
  0x92   :  { %v101_v25 = vpop.permute.xlu0 %100 }
  0x98   :  { %v317_v37 = vpop.permute.xlu0 %316 }
  0x99   :  { %v322_v38 = vpop.permute.xlu1 %321 }
  0x9c   :  { %v327_v39 = vpop.permute.xlu0 %326 }
  0x9d   :  { %v332_v40 = vpop.permute.xlu1 %331 }
  0xa0   :  { %v337_v44 = vpop.permute.xlu0 %336 }
  0xa1   :  { %v342_v49 = vpop.permute.xlu1 %341 }
  0xa4   :  { %v347_v56 = vpop.permute.xlu0 %346 }
 0x119   :  { %v818_v1 = vpop.f32.mrb[0].mxu0 }
 0x11a   :  { %v253_v2 = vadd.f32 %v818_v1, %v76_v63  ;;  %v247_v3 = vpop.f32.mrb[1].mxu0 }
 0x11b   :  { %v248_v4 = vadd.f32 %v247_v3, %v71_v61  ;;  %v352_v61 = vpop.permute.xlu1 %351 }
 0x11c   :  { %v287_v5 = vmax.f32 %v253_v2, 0.0 }
 0x11d   :  { %v286_v6 = vmax.f32 %v248_v4, 0.0  ;;  %v821_v7 = vpop.f32.mrb[2].mxu0 }
 0x11e   :  { %v263_v8 = vadd.f32 %v821_v7, %v86_v0  ;;  %v257_v9 = vpop.f32.mrb[3].mxu0 }
 0x11f   :  { %v258_v11 = vadd.f32 %v257_v9, %v81_v62  ;;  %v302_v12 = vpack.c.bf16 %v287_v5, %v286_v6  ;;  %v931_v9 = vld [vmem:[%s1258_s5 + $0x8] sm:$0xff]  }
 0x120   :  { %v289_v14 = vmax.f32 %v263_v8, 0.0 }
 0x121   :  { %v288_v15 = vmax.f32 %v258_v11, 0.0  ;;  %v824_v16 = vpop.f32.mrb[4].mxu0  ;;  %828 = vmatprep.subr.bf16.mxu1 %v302_v12  ;;  %v933_v11 = vld [vmem:[%s1258_s5 + $0x18] sm:$0xff]  }
 0x122   :  { %v273_v17 = vadd.f32 %v824_v16, %v96_v10  ;;  %v267_v18 = vpop.f32.mrb[5].mxu0  ;;  %829 = vmatpush3.bf16.msra.mxu1 %v302_v12  ;;  %v932_v10 = vld [vmem:[%s1258_s5 + $0x10] sm:$0xff]   ;;  %v959_v12 = vmov 0.0  }
 0x123   :  { %v303_v19 = vpack.c.bf16 %v289_v14, %v288_v15  ;;  %v268_v20 = vadd.f32 %v267_v18, %v91_v13  ;;  %v483_v13 = vpop.permute.xlu0 %482  ;;  %v488_v14 = vpop.permute.xlu1 %487 }
 0x124   :  { %v291_v21 = vmax.f32 %v273_v17, 0.0 }
 0x125   :  { %v290_v23 = vmax.f32 %v268_v20, 0.0  ;;  %v827_v24 = vpop.f32.mrb[6].mxu0  ;;  %830 = vmatprep.subr.bf16.mxu1 %v303_v19 }
 0x126   :  { %v283_v26 = vadd.f32 %v827_v24, %v106_v22  ;;  %v277_v27 = vpop.f32.mrb[7].mxu0  ;;  %831 = vmatpush3.bf16.msra.mxu1 %v303_v19 }
 0x127   :  { %v304_v28 = vpack.c.bf16 %v291_v21, %v290_v23  ;;  %v278_v29 = vadd.f32 %v277_v27, %v101_v25  ;;  %v493_v15 = vpop.permute.xlu0 %492  ;;  %v498_v16 = vpop.permute.xlu1 %497 }
 0x128   :  { %v293_v30 = vmax.f32 %v283_v26, 0.0 }
 0x129   :  { %v292_v31 = vmax.f32 %v278_v29, 0.0  ;;  %832 = vmatprep.subr.bf16.mxu1 %v304_v28 }
 0x12a   :  { %833 = vmatpush3.bf16.msra.mxu1 %v304_v28 }
 0x12b   :  { %v305_v32 = vpack.c.bf16 %v293_v30, %v292_v31  ;;  %v503_v20 = vpop.permute.xlu0 %502  ;;  %v508_v25 = vpop.permute.xlu1 %507 }
 0x12d   :  { %834 = vmatprep.subr.bf16.mxu1 %v305_v32 }
 0x12e   :  { %835 = vmatpush3.bf16.msra.mxu1 %v305_v32 }
 0x12f   :  { %v513_v32 = vpop.permute.xlu0 %512 }
 0x131   :  { %837 = vmatmul.mubr.msk.bf16.vlgmr.msra.gmra.mrb[0].mxu1 %vm374_vm2, %v927_v33 }
 0x132   :  { %840 = vmatprep.mubr.msk.bf16.mxu1 %vm374_vm2, %v928_v34 }
 0x139   :  { %841 = vmatmul.mubr.msk.bf16.gmra.mrb[4].mxu1 %vm374_vm2, %v929_v35 }
 0x13a   :  { %852 = vmatprep.mubr.msk.bf16.mxu1 %vm374_vm2, %v930_v36 }
 0x204   :  { %v838_v41 = vpop.f32.mrb[0].mxu1 }
 0x205   :  { %v430_v42 = vadd.f32 %v838_v41, %v327_v39  ;;  %v421_v43 = vpop.f32.mrb[1].mxu1 }
 0x206   :  { %v422_v45 = vadd.f32 %v421_v43, %v317_v37  ;;  %v839_v46 = vpop.f32.mrb[2].mxu1  ;;  %v518_v37 = vpop.permute.xlu1 %517 }
 0x207   :  { %v433_v47 = vadd.f32 %v839_v46, %v332_v40  ;;  %v424_v48 = vpop.f32.mrb[3].mxu1  ;;  %v454_v51 = vmax.f32 %v430_v42, 0.0 }
 0x208   :  { %v425_v50 = vadd.f32 %v424_v48, %v322_v38  ;;  %v452_v53 = vmax.f32 %v422_v45, 0.0 }
 0x209   :  { %v455_v52 = vmax.f32 %v433_v47, 0.0 }
 0x20a   :  { %v453_v54 = vmax.f32 %v425_v50, 0.0  ;;  %v636_v50 = vlaneseq }
 0x20b   :  { %v469_v55 = vpack.c.bf16 %v455_v52, %v454_v51 }
 0x20c   :  { %v468_v57 = vpack.c.bf16 %v453_v54, %v452_v53  ;;  %v842_v58 = vpop.f32.mrb[4].mxu1  ;;  %v637_v51 = vshrl.u32 %v636_v50, 7  ;;  %v634_v53 = vpop.permute.xlu0 %633 }
 0x20d   :  { %v446_v59 = vadd.f32 %v842_v58, %v347_v56  ;;  %v437_v60 = vpop.f32.mrb[5].mxu1 }
 0x20e   :  { %v438_v62 = vadd.f32 %v437_v60, %v337_v44  ;;  %v843_v63 = vpop.f32.mrb[6].mxu1  ;;  %844 = vmatprep.subr.bf16.mxu1 %v468_v57  ;;  %v638_v52 = vsub.s32 0, %v637_v51 }
 0x20f   :  { %v449_v0 = vadd.f32 %v843_v63, %v352_v61  ;;  %v440_v1 = vpop.f32.mrb[7].mxu1  ;;  %845 = vmatpush3.bf16.msra.mxu1 %v468_v57  ;;  %v458_v3 = vmax.f32 %v446_v59, 0.0 }
 0x210   :  { %v441_v2 = vadd.f32 %v440_v1, %v342_v49  ;;  %846 = vmatprep.subr.bf16.mxu1 %v469_v55  ;;  %v456_v5 = vmax.f32 %v438_v62, 0.0  ;;  %v625_v49 = vld [vmem:[%s1260_s7] sm:$0x1]  ;;  %v639_v54 = vrot.slane %v634_v53, %v638_v52 }
 0x211   :  { %v459_v4 = vmax.f32 %v449_v0, 0.0 }
 0x212   :  { %v457_v6 = vmax.f32 %v441_v2, 0.0 }
 0x213   :  { %v471_v7 = vpack.c.bf16 %v459_v4, %v458_v3  ;;  %847 = vmatpush3.bf16.msra.mxu1 %v469_v55 }
 0x214   :  { %v470_v8 = vpack.c.bf16 %v457_v6, %v456_v5 }
 0x216   :  { %848 = vmatprep.subr.bf16.mxu1 %v470_v8 }
 0x217   :  { %849 = vmatpush3.bf16.msra.mxu1 %v470_v8 }
 0x218   :  { %850 = vmatprep.subr.bf16.mxu1 %v471_v7 }
 0x21b   :  { %851 = vmatpush3.bf16.msra.mxu1 %v471_v7 }
 0x21c   :  { %860 = vmatprep.subr.bf16.mxu1 %v959_v12 }
 0x21e   :  { %853 = vmatmul.mubr.msk.bf16.vlgmr.msra.gmra.mrb[8].mxu1 %vm374_vm2, %v931_v9 }
 0x21f   :  { %856 = vmatprep.mubr.msk.bf16.mxu1 %vm374_vm2, %v932_v10 }
 0x226   :  { %857 = vmatmul.mubr.msk.bf16.gmra.mrb[12].mxu1 %vm374_vm2, %v933_v11 }
 0x227   :  { %868 = vmatprep.mubr.msk.bf16.mxu1 %vm960_vm3, %v959_v12 }
 0x2f1   :  { %v854_v17 = vpop.f32.mrb[8].mxu1 }
 0x2f2   :  { %v595_v18 = vadd.f32 %v854_v17, %v493_v15  ;;  %v586_v19 = vpop.f32.mrb[9].mxu1 }
 0x2f3   :  { %v587_v21 = vadd.f32 %v586_v19, %v483_v13  ;;  %v855_v22 = vpop.f32.mrb[10].mxu1 }
 0x2f4   :  { %v598_v23 = vadd.f32 %v855_v22, %v498_v16  ;;  %v589_v24 = vpop.f32.mrb[11].mxu1  ;;  %v619_v27 = vmax.f32 %v595_v18, 0.0 }
 0x2f5   :  { %v590_v26 = vadd.f32 %v589_v24, %v488_v14  ;;  %v617_v29 = vmax.f32 %v587_v21, 0.0 }
 0x2f6   :  { %v620_v28 = vmax.f32 %v598_v23, 0.0 }
 0x2f7   :  { %v618_v30 = vmax.f32 %v590_v26, 0.0 }
 0x2f8   :  { %v627_v31 = vpack.c.bf16 %v620_v28, %v619_v27 }
 0x2f9   :  { %v626_v33 = vpack.c.bf16 %v618_v30, %v617_v29  ;;  %v858_v34 = vpop.f32.mrb[12].mxu1 }
 0x2fa   :  { %v611_v35 = vadd.f32 %v858_v34, %v513_v32  ;;  %v602_v36 = vpop.f32.mrb[13].mxu1 }
 0x2fb   :  { %v603_v38 = vadd.f32 %v602_v36, %v503_v20  ;;  %v859_v39 = vpop.f32.mrb[14].mxu1  ;;  %861 = vmatpush3.bf16.msra.mxu1 %v626_v33 }
 0x2fc   :  { %v614_v40 = vadd.f32 %v859_v39, %v518_v37  ;;  %v605_v41 = vpop.f32.mrb[15].mxu1  ;;  %862 = vmatprep.subr.bf16.mxu1 %v959_v12  ;;  %v623_v43 = vmax.f32 %v611_v35, 0.0 }
 0x2fd   :  { %v606_v42 = vadd.f32 %v605_v41, %v508_v25  ;;  %v621_v45 = vmax.f32 %v603_v38, 0.0 }
 0x2fe   :  { %v624_v44 = vmax.f32 %v614_v40, 0.0 }
 0x2ff   :  { %v622_v46 = vmax.f32 %v606_v42, 0.0  ;;  %863 = vmatpush3.bf16.msra.mxu1 %v627_v31 }
 0x300   :  { %v629_v47 = vpack.c.bf16 %v624_v44, %v623_v43  ;;  %864 = vmatprep.subr.bf16.mxu1 %v959_v12 }
 0x301   :  { %v628_v48 = vpack.c.bf16 %v622_v46, %v621_v45 }
 0x303   :  { %865 = vmatpush3.bf16.msra.mxu1 %v628_v48 }
 0x304   :  { %866 = vmatprep.subr.bf16.mxu1 %v959_v12 }
 0x307   :  { %867 = vmatpush3.bf16.msra.mxu1 %v629_v47 }
 0x30a   :  { %869 = vmatmul.mubr.msk.bf16.vlgmr.msra.gmra.mrb[16].mxu1 %vm374_vm2, %v625_v49 }
 0x3dd   :  { %v677_v55 = vpop.f32.mrb[16].mxu1 }
 0x3de   :  { %v678_v56 = vadd.f32 %v677_v55, %v639_v54  ;;  %v870_v57 = vpop.f32.mrb[17].mxu1 }
 0x3df   :  { %v680_v58 = vpop.f32.mrb[18].mxu1 }
 0x3e0   :  { %683 = vst [vmem:[#allocation3] sm:$0x1] %v678_v56  ;;  %v871_v59 = vpop.f32.mrb[19].mxu1 }
 0x3e1   :  { %945 = shalt.err (!%p942_p4)
}
 0x3e2   :  { %s946_s4 = scalar_lea.hbm %s1262_s9, 16 }
 0x3e3   :  { %p947_p5 = scmp.ne.s32.totalorder %s1262_s9, %s946_s4  ;;  %p950_p6 = scmp.lt.u32.totalorder %s946_s4, %s1262_s9 }
 0x3e5   :  { %p952_p7 = pnand %p950_p6, %p947_p5 }
 0x3e7   :  { %955 = shalt.err (!%p952_p7)
}
 0x3e8   :  { %693 = dma.vmem_to_hbm [thread:$0]  %s691_s6, 16, %s1262_s9, [#allocation4]  }
 0x3e9   :  { %956 = dma.done.wait [#allocation4], 16  }
 0x3ea   :  { %957 = vsyncadd [#allocation4], 4294967280 }
 0x3eb   :  { %697 = vsyncpa [#allocation4], 1 }

</bundles_post_ra>
